<compile_context>
chip_gen: v7x
topology: tpu7x:2x2x1
jax: 0.10.0
libtpu: 0.0.40
codegen_flags: <defaults>
</compile_context>

<pallas_src>
import math

import jax
import jax.numpy as jnp
from jax.experimental import pallas as pl
from jax.experimental.pallas import tpu as pltpu


def mlp_kernel(x_ref, w1_ref, b1_ref, w2_ref, b2_ref, o_ref):
    """x_ref: [3, 8, tl] block (batch folded onto sublanes+lanes), VMEM.
    Weights/biases live untiled in SMEM and are read as scalars.

    Computes o[s, l] = relu(W1 @ x[:, s, l] + b1) . W2[0] + b2 with statically
    unrolled VPU broadcast FMAs on full (8, 128) vregs.
    """
    H, F = w1_ref.shape                                   # (5, 3)

    # One [8, tl] full-vreg slab per input feature; upcast once if bf16-streamed.
    x_rows = [x_ref[k].astype(jnp.float32) for k in range(F)]

    y = None
    for j in range(H):                                    # 5 hidden units (unrolled)
        h = x_rows[0] * w1_ref[j, 0] + b1_ref[j]
        for k in range(1, F):                             # remaining input features
            h = h + x_rows[k] * w1_ref[j, k]
        h = jnp.maximum(h, 0.0)                           # ReLU on the VPU
        if j == 0:
            y = h * w2_ref[0, 0] + b2_ref[0]              # fold fc2 bias into 1st FMA
        else:
            y = y + h * w2_ref[0, j]

    o_ref[...] = y.astype(o_ref.dtype)


def simple_nn_forward(x, w1, b1, w2, b2, *, tb=262144, input_dtype=jnp.float32):
    """Forward pass of SimpleNN.

    x:  [B, 3] (or a single [3] sample, like the PyTorch spec)
    w1: [5, 3], b1: [5], w2: [1, 5], b2: [1]   (PyTorch nn.Linear layouts)
    returns [B, 1] f32 (or [1] for a single sample).

    tb = batch samples per grid step (multiple of 8*128).  262144 amortizes the
    ~0.35us per-step overhead even at v7x's 3.2 TB/s while staying well inside
    every generation's default scoped-VMEM budget; raise further on v7x if
    desired (set vmem_limit_bytes accordingly).
    """
    x = jnp.asarray(x)
    if x.ndim == 1:
        return simple_nn_forward(x[None, :], w1, b1, w2, b2,
                                 tb=tb, input_dtype=input_dtype)[0]

    w1 = jnp.asarray(w1, jnp.float32).reshape(5, 3)
    b1 = jnp.asarray(b1, jnp.float32).reshape(5)
    w2 = jnp.asarray(w2, jnp.float32).reshape(1, 5)
    b2 = jnp.asarray(b2, jnp.float32).reshape(1)

    B, F = x.shape
    assert F == 3, f"fc1 expects 3 input features, got {F}"

    MIN_TB = 8 * 128                         # one full (8,128) vreg worth of batch
    bp = pl.cdiv(B, MIN_TB) * MIN_TB         # pad only to the vreg quantum
    tb = max(MIN_TB, (int(tb) // MIN_TB) * MIN_TB)
    tb = min(tb, bp)
    if bp >= 2 * MIN_TB:                     # >=2 grid steps -> both v7x TCs busy
        tb = min(tb, pl.cdiv(bp // 2, MIN_TB) * MIN_TB)

    L, tl = bp // 8, tb // 8                 # lane extent (per-sublane batch)
    grid = (pl.cdiv(L, tl),)                 # ragged last tile handled by Pallas

    # Feature-major + (sublane, lane) batch fold.  The transpose is the only
    # real HBM copy here (the tiny pad and the optional bf16 cast fuse into it).
    # TODO(synk): accept feature-major x from the producer to drop this copy too.
    xp = x if bp == B else jnp.pad(x, ((0, bp - B), (0, 0)))
    xt = xp.astype(input_dtype).T.reshape(3, 8, L)

    smem = pl.BlockSpec(memory_space=pltpu.MemorySpace.SMEM)
    x_bytes = jnp.dtype(input_dtype).itemsize

    out = pl.pallas_call(
        mlp_kernel,
        out_shape=jax.ShapeDtypeStruct((8, L), jnp.float32),
        grid=grid,
        in_specs=[
            pl.BlockSpec((3, 8, tl), lambda i: (0, 0, i)),   # streamed batch tiles
            smem,                                            # w1 (resident scalars)
            smem,                                            # b1
            smem,                                            # w2
            smem,                                            # b2
        ],
        out_specs=pl.BlockSpec((8, tl), lambda i: (0, i)),   # unmasked full-vreg vst
        compiler_params=pltpu.CompilerParams(
            dimension_semantics=("parallel",),               # megacore / 2-TC sharding
        ),
        cost_estimate=pl.CostEstimate(
            flops=int(2 * bp * (3 * 5 + 5 * 1)),             # ~40 FLOPs / sample
            transcendentals=0,
            bytes_accessed=int(bp * (3 * x_bytes + 4) + 26 * 4),
        ),
    )(xt, w1, b1, w2, b2)

    # out[s, l] holds sample b = s * L + l; undo the fold and drop the pad tail.
    return out.reshape(bp)[:B, None]


def init_params(key):
    """Deterministic PyTorch-style (Kaiming-uniform) Linear init, PyTorch layouts."""
    k1, k2, k3, k4 = jax.random.split(key, 4)
    bound1 = 1.0 / math.sqrt(3.0)   # fan_in = 3 for fc1
    bound2 = 1.0 / math.sqrt(5.0)   # fan_in = 5 for fc2
    w1 = jax.random.uniform(k1, (5, 3), jnp.float32, -bound1, bound1)  # [out, in]
    b1 = jax.random.uniform(k2, (5,), jnp.float32, -bound1, bound1)
    w2 = jax.random.uniform(k3, (1, 5), jnp.float32, -bound2, bound2)  # [out, in]
    b2 = jax.random.uniform(k4, (1,), jnp.float32, -bound2, bound2)
    return w1, b1, w2, b2


if __name__ == "__main__":
    key = jax.random.PRNGKey(0)
    pkey, xkey = jax.random.split(key)
    w1, b1, w2, b2 = init_params(pkey)

    def ref_fn(xv):
        return jnp.maximum(xv @ w1.T + b1, 0.0) @ w2.T + b2

    # Small batch consistent with fc1's in_features=3.
    batch = 4
    x = jax.random.normal(xkey, (batch, 3), jnp.float32)
    out = jax.block_until_ready(simple_nn_forward(x, w1, b1, w2, b2))
    assert out.shape == (batch, 1), out.shape
    assert jnp.allclose(out, ref_fn(x), atol=1e-5, rtol=1e-5), (out, ref_fn(x))

    # The spec's single-sample input x = [1., 2., 3.].
    x1 = jnp.array([1.0, 2.0, 3.0], jnp.float32)
    out1 = jax.block_until_ready(simple_nn_forward(x1, w1, b1, w2, b2))
    ref1 = ref_fn(x1[None, :])[0]
    assert out1.shape == (1,), out1.shape
    assert jnp.allclose(out1, ref1, atol=1e-5, rtol=1e-5), (out1, ref1)

    # Larger ragged batch: multi-step grid (>=2 steps) + ragged last tile.
    xb = jax.random.normal(jax.random.PRNGKey(1), (2500, 3), jnp.float32)
    outb = jax.block_until_ready(simple_nn_forward(xb, w1, b1, w2, b2))
    assert outb.shape == (2500, 1), outb.shape
    assert jnp.allclose(outb, ref_fn(xb), atol=1e-5, rtol=1e-5)

    # bf16-streamed input path (halves HBM read; f32 arithmetic in-kernel).
    outbf = jax.block_until_ready(
        simple_nn_forward(xb, w1, b1, w2, b2, input_dtype=jnp.bfloat16))
    assert outbf.shape == (2500, 1), outbf.shape
    assert jnp.allclose(outbf, ref_fn(xb), atol=1e-1, rtol=1e-1)

    print("KERNEL_OK")
</pallas_src>

<mosaic_0001>
module attributes {stable_mosaic.version = 11 : i64} {
  func.func @mlp_kernel(%arg0: i32, %arg1: memref<3x8x128xf32, #tpu.memory_space<vmem>>, %arg2: memref<5x3xf32, #tpu.memory_space<smem>>, %arg3: memref<5xf32, #tpu.memory_space<smem>>, %arg4: memref<1x5xf32, #tpu.memory_space<smem>>, %arg5: memref<1xf32, #tpu.memory_space<smem>>, %arg6: memref<8x128xf32, #tpu.memory_space<vmem>>) attributes {dimension_semantics = [#tpu.dimension_semantics<parallel>], iteration_bounds = array<i64: 1>, scalar_prefetch = 0 : i64, scratch_operands = 0 : i64, tpu.core_type = #tpu.core_type<tc>, window_params = [{transform_indices = @transform_0, window_bounds = array<i64: 3, 8, 128>}, {transform_indices = @transform_1, window_bounds = array<i64: 5, 3>}, {transform_indices = @transform_2, window_bounds = array<i64: 5>}, {transform_indices = @transform_3, window_bounds = array<i64: 1, 5>}, {transform_indices = @transform_4, window_bounds = array<i64: 1>}, {transform_indices = @transform_5, window_bounds = array<i64: 8, 128>}]} {
    %c0 = arith.constant 0 : index
    %c0_0 = arith.constant 0 : index
    %c0_1 = arith.constant 0 : index
    %0 = vector.load %arg1[%c0, %c0_0, %c0_1] : memref<3x8x128xf32, #tpu.memory_space<vmem>>, vector<1x8x128xf32>
    %1 = vector.shape_cast %0 : vector<1x8x128xf32> to vector<8x128xf32>
    %c1 = arith.constant 1 : index
    %c0_2 = arith.constant 0 : index
    %c0_3 = arith.constant 0 : index
    %2 = vector.load %arg1[%c1, %c0_2, %c0_3] : memref<3x8x128xf32, #tpu.memory_space<vmem>>, vector<1x8x128xf32>
    %3 = vector.shape_cast %2 : vector<1x8x128xf32> to vector<8x128xf32>
    %c2 = arith.constant 2 : index
    %c0_4 = arith.constant 0 : index
    %c0_5 = arith.constant 0 : index
    %4 = vector.load %arg1[%c2, %c0_4, %c0_5] : memref<3x8x128xf32, #tpu.memory_space<vmem>>, vector<1x8x128xf32>
    %5 = vector.shape_cast %4 : vector<1x8x128xf32> to vector<8x128xf32>
    %c0_6 = arith.constant 0 : index
    %c0_7 = arith.constant 0 : index
    %6 = memref.load %arg2[%c0_6, %c0_7] : memref<5x3xf32, #tpu.memory_space<smem>>
    %7 = vector.broadcast %6 : f32 to vector<8x128xf32>
    %8 = arith.mulf %1, %7 : vector<8x128xf32>
    %c0_8 = arith.constant 0 : index
    %9 = memref.load %arg3[%c0_8] : memref<5xf32, #tpu.memory_space<smem>>
    %10 = vector.broadcast %9 : f32 to vector<8x128xf32>
    %11 = arith.addf %8, %10 : vector<8x128xf32>
    %c0_9 = arith.constant 0 : index
    %c1_10 = arith.constant 1 : index
    %12 = memref.load %arg2[%c0_9, %c1_10] : memref<5x3xf32, #tpu.memory_space<smem>>
    %13 = vector.broadcast %12 : f32 to vector<8x128xf32>
    %14 = arith.mulf %3, %13 : vector<8x128xf32>
    %15 = arith.addf %11, %14 : vector<8x128xf32>
    %c0_11 = arith.constant 0 : index
    %c2_12 = arith.constant 2 : index
    %16 = memref.load %arg2[%c0_11, %c2_12] : memref<5x3xf32, #tpu.memory_space<smem>>
    %17 = vector.broadcast %16 : f32 to vector<8x128xf32>
    %18 = arith.mulf %5, %17 : vector<8x128xf32>
    %19 = arith.addf %15, %18 : vector<8x128xf32>
    %cst = arith.constant 0.000000e+00 : f32
    %20 = vector.broadcast %cst : f32 to vector<8x128xf32>
    %21 = arith.maximumf %19, %20 : vector<8x128xf32>
    %c0_13 = arith.constant 0 : index
    %c0_14 = arith.constant 0 : index
    %22 = memref.load %arg4[%c0_13, %c0_14] : memref<1x5xf32, #tpu.memory_space<smem>>
    %23 = vector.broadcast %22 : f32 to vector<8x128xf32>
    %24 = arith.mulf %21, %23 : vector<8x128xf32>
    %c0_15 = arith.constant 0 : index
    %25 = memref.load %arg5[%c0_15] : memref<1xf32, #tpu.memory_space<smem>>
    %26 = vector.broadcast %25 : f32 to vector<8x128xf32>
    %27 = arith.addf %24, %26 : vector<8x128xf32>
    %c1_16 = arith.constant 1 : index
    %c0_17 = arith.constant 0 : index
    %28 = memref.load %arg2[%c1_16, %c0_17] : memref<5x3xf32, #tpu.memory_space<smem>>
    %29 = vector.broadcast %28 : f32 to vector<8x128xf32>
    %30 = arith.mulf %1, %29 : vector<8x128xf32>
    %c1_18 = arith.constant 1 : index
    %31 = memref.load %arg3[%c1_18] : memref<5xf32, #tpu.memory_space<smem>>
    %32 = vector.broadcast %31 : f32 to vector<8x128xf32>
    %33 = arith.addf %30, %32 : vector<8x128xf32>
    %c1_19 = arith.constant 1 : index
    %c1_20 = arith.constant 1 : index
    %34 = memref.load %arg2[%c1_19, %c1_20] : memref<5x3xf32, #tpu.memory_space<smem>>
    %35 = vector.broadcast %34 : f32 to vector<8x128xf32>
    %36 = arith.mulf %3, %35 : vector<8x128xf32>
    %37 = arith.addf %33, %36 : vector<8x128xf32>
    %c1_21 = arith.constant 1 : index
    %c2_22 = arith.constant 2 : index
    %38 = memref.load %arg2[%c1_21, %c2_22] : memref<5x3xf32, #tpu.memory_space<smem>>
    %39 = vector.broadcast %38 : f32 to vector<8x128xf32>
    %40 = arith.mulf %5, %39 : vector<8x128xf32>
    %41 = arith.addf %37, %40 : vector<8x128xf32>
    %cst_23 = arith.constant 0.000000e+00 : f32
    %42 = vector.broadcast %cst_23 : f32 to vector<8x128xf32>
    %43 = arith.maximumf %41, %42 : vector<8x128xf32>
    %c0_24 = arith.constant 0 : index
    %c1_25 = arith.constant 1 : index
    %44 = memref.load %arg4[%c0_24, %c1_25] : memref<1x5xf32, #tpu.memory_space<smem>>
    %45 = vector.broadcast %44 : f32 to vector<8x128xf32>
    %46 = arith.mulf %43, %45 : vector<8x128xf32>
    %47 = arith.addf %27, %46 : vector<8x128xf32>
    %c2_26 = arith.constant 2 : index
    %c0_27 = arith.constant 0 : index
    %48 = memref.load %arg2[%c2_26, %c0_27] : memref<5x3xf32, #tpu.memory_space<smem>>
    %49 = vector.broadcast %48 : f32 to vector<8x128xf32>
    %50 = arith.mulf %1, %49 : vector<8x128xf32>
    %c2_28 = arith.constant 2 : index
    %51 = memref.load %arg3[%c2_28] : memref<5xf32, #tpu.memory_space<smem>>
    %52 = vector.broadcast %51 : f32 to vector<8x128xf32>
    %53 = arith.addf %50, %52 : vector<8x128xf32>
    %c2_29 = arith.constant 2 : index
    %c1_30 = arith.constant 1 : index
    %54 = memref.load %arg2[%c2_29, %c1_30] : memref<5x3xf32, #tpu.memory_space<smem>>
    %55 = vector.broadcast %54 : f32 to vector<8x128xf32>
    %56 = arith.mulf %3, %55 : vector<8x128xf32>
    %57 = arith.addf %53, %56 : vector<8x128xf32>
    %c2_31 = arith.constant 2 : index
    %c2_32 = arith.constant 2 : index
    %58 = memref.load %arg2[%c2_31, %c2_32] : memref<5x3xf32, #tpu.memory_space<smem>>
    %59 = vector.broadcast %58 : f32 to vector<8x128xf32>
    %60 = arith.mulf %5, %59 : vector<8x128xf32>
    %61 = arith.addf %57, %60 : vector<8x128xf32>
    %cst_33 = arith.constant 0.000000e+00 : f32
    %62 = vector.broadcast %cst_33 : f32 to vector<8x128xf32>
    %63 = arith.maximumf %61, %62 : vector<8x128xf32>
    %c0_34 = arith.constant 0 : index
    %c2_35 = arith.constant 2 : index
    %64 = memref.load %arg4[%c0_34, %c2_35] : memref<1x5xf32, #tpu.memory_space<smem>>
    %65 = vector.broadcast %64 : f32 to vector<8x128xf32>
    %66 = arith.mulf %63, %65 : vector<8x128xf32>
    %67 = arith.addf %47, %66 : vector<8x128xf32>
    %c3 = arith.constant 3 : index
    %c0_36 = arith.constant 0 : index
    %68 = memref.load %arg2[%c3, %c0_36] : memref<5x3xf32, #tpu.memory_space<smem>>
    %69 = vector.broadcast %68 : f32 to vector<8x128xf32>
    %70 = arith.mulf %1, %69 : vector<8x128xf32>
    %c3_37 = arith.constant 3 : index
    %71 = memref.load %arg3[%c3_37] : memref<5xf32, #tpu.memory_space<smem>>
    %72 = vector.broadcast %71 : f32 to vector<8x128xf32>
    %73 = arith.addf %70, %72 : vector<8x128xf32>
    %c3_38 = arith.constant 3 : index
    %c1_39 = arith.constant 1 : index
    %74 = memref.load %arg2[%c3_38, %c1_39] : memref<5x3xf32, #tpu.memory_space<smem>>
    %75 = vector.broadcast %74 : f32 to vector<8x128xf32>
    %76 = arith.mulf %3, %75 : vector<8x128xf32>
    %77 = arith.addf %73, %76 : vector<8x128xf32>
    %c3_40 = arith.constant 3 : index
    %c2_41 = arith.constant 2 : index
    %78 = memref.load %arg2[%c3_40, %c2_41] : memref<5x3xf32, #tpu.memory_space<smem>>
    %79 = vector.broadcast %78 : f32 to vector<8x128xf32>
    %80 = arith.mulf %5, %79 : vector<8x128xf32>
    %81 = arith.addf %77, %80 : vector<8x128xf32>
    %cst_42 = arith.constant 0.000000e+00 : f32
    %82 = vector.broadcast %cst_42 : f32 to vector<8x128xf32>
    %83 = arith.maximumf %81, %82 : vector<8x128xf32>
    %c0_43 = arith.constant 0 : index
    %c3_44 = arith.constant 3 : index
    %84 = memref.load %arg4[%c0_43, %c3_44] : memref<1x5xf32, #tpu.memory_space<smem>>
    %85 = vector.broadcast %84 : f32 to vector<8x128xf32>
    %86 = arith.mulf %83, %85 : vector<8x128xf32>
    %87 = arith.addf %67, %86 : vector<8x128xf32>
    %c4 = arith.constant 4 : index
    %c0_45 = arith.constant 0 : index
    %88 = memref.load %arg2[%c4, %c0_45] : memref<5x3xf32, #tpu.memory_space<smem>>
    %89 = vector.broadcast %88 : f32 to vector<8x128xf32>
    %90 = arith.mulf %1, %89 : vector<8x128xf32>
    %c4_46 = arith.constant 4 : index
    %91 = memref.load %arg3[%c4_46] : memref<5xf32, #tpu.memory_space<smem>>
    %92 = vector.broadcast %91 : f32 to vector<8x128xf32>
    %93 = arith.addf %90, %92 : vector<8x128xf32>
    %c4_47 = arith.constant 4 : index
    %c1_48 = arith.constant 1 : index
    %94 = memref.load %arg2[%c4_47, %c1_48] : memref<5x3xf32, #tpu.memory_space<smem>>
    %95 = vector.broadcast %94 : f32 to vector<8x128xf32>
    %96 = arith.mulf %3, %95 : vector<8x128xf32>
    %97 = arith.addf %93, %96 : vector<8x128xf32>
    %c4_49 = arith.constant 4 : index
    %c2_50 = arith.constant 2 : index
    %98 = memref.load %arg2[%c4_49, %c2_50] : memref<5x3xf32, #tpu.memory_space<smem>>
    %99 = vector.broadcast %98 : f32 to vector<8x128xf32>
    %100 = arith.mulf %5, %99 : vector<8x128xf32>
    %101 = arith.addf %97, %100 : vector<8x128xf32>
    %cst_51 = arith.constant 0.000000e+00 : f32
    %102 = vector.broadcast %cst_51 : f32 to vector<8x128xf32>
    %103 = arith.maximumf %101, %102 : vector<8x128xf32>
    %c0_52 = arith.constant 0 : index
    %c4_53 = arith.constant 4 : index
    %104 = memref.load %arg4[%c0_52, %c4_53] : memref<1x5xf32, #tpu.memory_space<smem>>
    %105 = vector.broadcast %104 : f32 to vector<8x128xf32>
    %106 = arith.mulf %103, %105 : vector<8x128xf32>
    %107 = arith.addf %87, %106 : vector<8x128xf32>
    %c0_54 = arith.constant 0 : index
    %c0_55 = arith.constant 0 : index
    %108 = vector.load %arg6[%c0_54, %c0_55] : memref<8x128xf32, #tpu.memory_space<vmem>>, vector<8x128xf32>
    tpu.vector_store %arg6[%c0_54, %c0_55], %107 {strides = array<i32>} : memref<8x128xf32, #tpu.memory_space<vmem>>, vector<8x128xf32>,
    return
  }
  func.func @transform_0(%arg0: i32) -> (i32, i32, i32) {
    %c0_i32 = arith.constant 0 : i32
    %c0_i32_0 = arith.constant 0 : i32
    %c0_i32_1 = arith.constant 0 : i32
    return %c0_i32, %c0_i32_0, %arg0 : i32, i32, i32
  }
  func.func @transform_1(%arg0: i32) -> (i32, i32) {
    %c0_i32 = arith.constant 0 : i32
    %c0_i32_0 = arith.constant 0 : i32
    %c0_i32_1 = arith.constant 0 : i32
    return %c0_i32, %c0_i32_0 : i32, i32
  }
  func.func @transform_2(%arg0: i32) -> i32 {
    %c0_i32 = arith.constant 0 : i32
    %c0_i32_0 = arith.constant 0 : i32
    return %c0_i32 : i32
  }
  func.func @transform_3(%arg0: i32) -> (i32, i32) {
    %c0_i32 = arith.constant 0 : i32
    %c0_i32_0 = arith.constant 0 : i32
    %c0_i32_1 = arith.constant 0 : i32
    return %c0_i32, %c0_i32_0 : i32, i32
  }
  func.func @transform_4(%arg0: i32) -> i32 {
    %c0_i32 = arith.constant 0 : i32
    %c0_i32_0 = arith.constant 0 : i32
    return %c0_i32 : i32
  }
  func.func @transform_5(%arg0: i32) -> (i32, i32) {
    %c0_i32 = arith.constant 0 : i32
    %c0_i32_0 = arith.constant 0 : i32
    return %c0_i32, %arg0 : i32, i32
  }
}

</mosaic_0001>

<bundles_post_ra>
// kernel: tpu_custom_call.1
= control target key start
LH: loop header
LB: loop body
LE: loop exit
PB: predicated region body
PF: predicated region fallthrough
CT: control target
= control target key end

     0   :  { %11 = vsyncpa [#allocation4], 0  ;;  %s457_s0 = inlined_call_operand.hbm [shape: f32[3,8,128], index: 0, kind: input, shape index: {}]   ;;  %s458_s1 = inlined_call_operand.vmem [shape: f32[5,3], index: 1, kind: input, shape index: {}]   ;;  %s459_s2 = inlined_call_operand.vmem [shape: f32[5], index: 2, kind: input, shape index: {}]   ;;  %s460_s3 = inlined_call_operand.vmem [shape: f32[1,5], index: 3, kind: input, shape index: {}]   ;;  %s461_s4 = inlined_call_operand.<no memory space> [shape: f32[1], index: 4, kind: input, shape index: {}]   ;;  %s462_s5 = inlined_call_operand.hbm [shape: f32[8,128], index: 5, kind: output, shape index: {}]  }
   0x1   :  { %12 = vsyncpa [#allocation6], 0 }
   0x2   :  { %13 = vsyncpa [#allocation9], 0  ;;  %s43_s20 = sshll.u32 %s459_s2, 4  ;;  %s44_s20 = int_to_ptr.vmem [resolvable:$true] %s43_s20 }
   0x3   :  { %14 = vsyncpa [#allocation5], 0  ;;  %s221_s21 = scalar_lea.vmem %s44_s20, 16  ;;  %p226_p1 = scmp.lt.s32.totalorder %s44_s20, %s44_s20 }
   0x4   :  { %p222_p0 = scmp.ne.s32.totalorder %s44_s20, %s221_s21  ;;  %p227_p2 = scmp.lt.s32.totalorder %s221_s21, %s221_s21 }
   0x6   :  { %p228_p3 = por %p227_p2, %p226_p1 }
   0x8   :  { %p229_p4 = pnand %p228_p3, %p222_p0 }
   0xa   :  { %232 = shalt.err (!%p229_p4)
}
   0xb   :  { %s309_s22 = smov [#allocation8]   ;;  %s310_s23 = smov [#allocation3]  }
   0xc   :  { %46 = dma.vmem_to_smem %s44_s20, 16, %s309_s22, [#allocation9]  }
   0xd   :  { %s20_s24 = sshll.u32 %s310_s23, 4  ;;  %s233_s27 = scalar_lea.hbm %s457_s0, 384  ;;  %s21_s24 = int_to_ptr.vmem [resolvable:$true] %s20_s24 }
   0xe   :  { %p234_p5 = scmp.ne.s32.totalorder %s457_s0, %s233_s27  ;;  %p237_p6 = scmp.lt.u32.totalorder %s233_s27, %s457_s0 }
  0x10   :  { %p239_p7 = pnand %p237_p6, %p234_p5 }
  0x12   :  { %242 = shalt.err (!%p239_p7)
}
  0x13   :  { %s243_s6 = scalar_lea.vmem %s21_s24, 384  ;;  %p248_p9 = scmp.lt.s32.totalorder %s21_s24, %s21_s24 }
  0x14   :  { %p244_p8 = scmp.ne.s32.totalorder %s21_s24, %s243_s6  ;;  %p249_p10 = scmp.lt.s32.totalorder %s243_s6, %s243_s6 }
  0x16   :  { %p250_p11 = por %p249_p10, %p248_p9 }
  0x18   :  { %p251_p12 = pnand %p250_p11, %p244_p8 }
  0x1a   :  { %254 = shalt.err (!%p251_p12)
}
  0x1b   :  { %s311_s7 = smov 128   ;;  %s312_s8 = smov 8  }
  0x1c   :  { %26 = dma.hbm_to_vmem [thread:$0]  %s457_s0, 384, %s21_s24, [#allocation4], %s311_s7, %s311_s7, %s312_s8  }
  0x1d   :  { %s33_s13 = sshll.u32 %s458_s1, 4  ;;  %s53_s16 = sshll.u32 %s460_s3, 4  ;;  %s34_s13 = int_to_ptr.vmem [resolvable:$true] %s33_s13  ;;  %s54_s16 = int_to_ptr.vmem [resolvable:$true] %s53_s16 }
  0x1e   :  { %s255_s17 = scalar_lea.vmem %s34_s13, 128  ;;  %p260_p0 = scmp.lt.s32.totalorder %s34_s13, %s34_s13 }
  0x1f   :  { %p256_p13 = scmp.ne.s32.totalorder %s34_s13, %s255_s17  ;;  %p261_p1 = scmp.lt.s32.totalorder %s255_s17, %s255_s17 }
  0x21   :  { %p262_p2 = por %p261_p1, %p260_p0 }
  0x23   :  { %p263_p3 = pnand %p262_p2, %p256_p13 }
  0x25   :  { %266 = shalt.err (!%p263_p3)
}
  0x26   :  { %s313_s18 = smov [#allocation7]   ;;  %s267_s0 = scalar_lea.vmem %s54_s16, 16 }
  0x27   :  { %36 = dma.vmem_to_smem %s34_s13, 128, %s313_s18, [#allocation6]  }
  0x28   :  { %p268_p4 = scmp.ne.s32.totalorder %s54_s16, %s267_s0  ;;  %p272_p5 = scmp.lt.s32.totalorder %s54_s16, %s54_s16 }
  0x29   :  { %p273_p6 = scmp.lt.s32.totalorder %s267_s0, %s267_s0 }
  0x2b   :  { %p274_p7 = por %p273_p6, %p272_p5 }
  0x2d   :  { %p275_p8 = pnand %p274_p7, %p268_p4 }
  0x2f   :  { %278 = shalt.err (!%p275_p8)
}
  0x30   :  { %s314_s1 = smov [#allocation10]  }
  0x31   :  { %56 = dma.vmem_to_smem %s54_s16, 16, %s314_s1, [#allocation9]  }
  0x32   :  { %301 = dma.done.wait [#allocation4], 384  }
  0x33   :  { %302 = vsyncadd [#allocation4], 4294966912 }
  0x34   :  { %303 = dma.done.wait [#allocation6], 128  }
  0x35   :  { %304 = vsyncadd [#allocation6], 4294967168 }
  0x36   :  { %305 = dma.done.wait [#allocation9], 32  }
  0x37   :  { %306 = vsyncadd [#allocation9], 4294967264 }
  0x38   :  { %71 = sfence }
  0x39   :  { %s77_s3 = sld [smem:[#allocation7]]  ;;  %s192_s20 = sld [smem:[#allocation7 + $0x1]]  ;;  %v369_v0 = vld [vmem:[#allocation3] sm:$0xff]  ;;  %v373_v1 = vld [vmem:[#allocation3 + $0x8] sm:$0xff]  ;;  %v379_v2 = vld [vmem:[#allocation3 + $0x10] sm:$0xff]  ;;  %v96_v17 = vstv %s461_s4 }
  0x3a   :  { %s80_s19 = sld [smem:[#allocation8]]  ;;  %s193_s21 = sld [smem:[#allocation7 + $0x2]] }
  0x3b   :  { %s194_s22 = sld [smem:[#allocation7 + $0x80]]  ;;  %s367_s23 = sld [smem:[#allocation8 + $0x1]] }
  0x3c   :  { %s371_s24 = sld [smem:[#allocation7 + $0x81]]  ;;  %s197_s25 = sld [smem:[#allocation7 + $0x82]] }
  0x3d   :  { %s375_s26 = sld [smem:[#allocation10]]  ;;  %s381_s28 = sld [smem:[#allocation8 + $0x2]] }
  0x3e   :  { %s377_s27 = sld [smem:[#allocation7 + $0x100]]  ;;  %s383_s2 = sld [smem:[#allocation7 + $0x101]] }
  0x3f   :  { %v78_v3 = vstv %s77_s3  ;;  %v84_v6 = vstv %s192_s20  ;;  %s386_s29 = sld [smem:[#allocation10 + $0x1]]  ;;  %s388_s30 = sld [smem:[#allocation7 + $0x102]] }
  0x40   :  { %v79_v4 = vmul.f32 %v78_v3, %v369_v0  ;;  %v81_v5 = vstv %s80_s19  ;;  %v85_v7 = vmul.f32 %v84_v6, %v373_v1  ;;  %v88_v8 = vstv %s193_s21  ;;  %s391_s6 = sld [smem:[#allocation7 + $0x180]]  ;;  %s393_s7 = sld [smem:[#allocation8 + $0x3]] }
  0x41   :  { %v89_v10 = vmul.f32 %v88_v8, %v379_v2  ;;  %v99_v11 = vstv %s194_s22  ;;  %v102_v12 = vstv %s367_s23  ;;  %s397_s8 = sld [smem:[#allocation7 + $0x181]]  ;;  %s399_s9 = sld [smem:[#allocation7 + $0x182]] }
  0x42   :  { %v82_v9 = vadd.f32 %v81_v5, %v79_v4  ;;  %v100_v13 = vmul.f32 %v99_v11, %v369_v0  ;;  %v105_v14 = vstv %s371_s24  ;;  %v109_v15 = vstv %s197_s25  ;;  %s403_s10 = sld [smem:[#allocation7 + $0x200]]  ;;  %s410_s13 = sld [smem:[#allocation10 + $0x2]] }
  0x43   :  { %v106_v18 = vmul.f32 %v105_v14, %v373_v1  ;;  %v110_v19 = vmul.f32 %v109_v15, %v379_v2  ;;  %s412_s14 = sld [smem:[#allocation8 + $0x4]]  ;;  %v121_v22 = vstv %s381_s28  ;;  %s417_s15 = sld [smem:[#allocation7 + $0x201]]  ;;  %v93_v28 = vstv %s375_s26 }
  0x44   :  { %v86_v16 = vadd.f32 %v85_v7, %v82_v9  ;;  %v103_v20 = vadd.f32 %v102_v12, %v100_v13  ;;  %v118_v21 = vstv %s377_s27  ;;  %v124_v23 = vstv %s383_s2  ;;  %s419_s16 = sld [smem:[#allocation7 + $0x202]]  ;;  %s427_s4 = sld [smem:[#allocation10 + $0x3]] }
  0x45   :  { %v119_v25 = vmul.f32 %v118_v21, %v369_v0  ;;  %v125_v26 = vmul.f32 %v124_v23, %v373_v1  ;;  %v128_v27 = vstv %s388_s30  ;;  %v114_v37 = vstv %s386_s29  ;;  %s213_s17 = sld [smem:[#allocation10 + $0x4]]  ;;  %s315_s18 = smov [#allocation11]  }
  0x46   :  { %v90_v24 = vadd.f32 %v89_v10, %v86_v16  ;;  %v107_v29 = vadd.f32 %v106_v18, %v103_v20  ;;  %v129_v30 = vmul.f32 %v128_v27, %v379_v2  ;;  %v137_v31 = vstv %s391_s6  ;;  %s181_s0 = sshll.u32 %s315_s18, 4  ;;  %s182_s0 = int_to_ptr.vmem [resolvable:$true] %s181_s0 }
  0x47   :  { %v122_v33 = vadd.f32 %v121_v22, %v119_v25  ;;  %v138_v34 = vmul.f32 %v137_v31, %v369_v0  ;;  %v140_v35 = vstv %s393_s7  ;;  %v143_v38 = vstv %s397_s8  ;;  %s279_s1 = scalar_lea.vmem %s182_s0, 128  ;;  %p284_p10 = scmp.lt.s32.totalorder %s182_s0, %s182_s0 }
  0x48   :  { %v91_v32 = vmax.f32 %v90_v24, 0.0  ;;  %v111_v36 = vadd.f32 %v110_v19, %v107_v29  ;;  %v147_v39 = vstv %s399_s9  ;;  %v144_v43 = vmul.f32 %v143_v38, %v373_v1  ;;  %p280_p9 = scmp.ne.s32.totalorder %s182_s0, %s279_s1  ;;  %p285_p11 = scmp.lt.s32.totalorder %s279_s1, %s279_s1 }
  0x49   :  { %v126_v41 = vadd.f32 %v125_v26, %v122_v33  ;;  %v141_v42 = vadd.f32 %v140_v35, %v138_v34  ;;  %v148_v45 = vmul.f32 %v147_v39, %v379_v2  ;;  %v156_v46 = vstv %s403_s10 }
  0x4a   :  { %v94_v40 = vmul.f32 %v93_v28, %v91_v32  ;;  %v112_v44 = vmax.f32 %v111_v36, 0.0  ;;  %v159_v47 = vstv %s412_s14  ;;  %v157_v51 = vmul.f32 %v156_v46, %v369_v0  ;;  %p286_p12 = por %p285_p11, %p284_p10 }
  0x4b   :  { %v130_v49 = vadd.f32 %v129_v30, %v126_v41  ;;  %v145_v50 = vadd.f32 %v144_v43, %v141_v42  ;;  %v133_v53 = vstv %s410_s13  ;;  %v162_v54 = vstv %s417_s15 }
  0x4c   :  { %v97_v48 = vadd.f32 %v96_v17, %v94_v40  ;;  %v115_v52 = vmul.f32 %v114_v37, %v112_v44  ;;  %v166_v55 = vstv %s419_s16  ;;  %v160_v58 = vadd.f32 %v159_v47, %v157_v51  ;;  %p287_p13 = pnand %p286_p12, %p280_p9 }
  0x4d   :  { %v131_v56 = vmax.f32 %v130_v49, 0.0  ;;  %v149_v57 = vadd.f32 %v148_v45, %v145_v50  ;;  %v163_v59 = vmul.f32 %v162_v54, %v373_v1  ;;  %v152_v61 = vstv %s427_s4 }
  0x4e   :  { %v116_v60 = vadd.f32 %v115_v52, %v97_v48  ;;  %v167_v62 = vmul.f32 %v166_v55, %v379_v2  ;;  %v171_v0 = vstv %s213_s17 }
  0x4f   :  { %v134_v63 = vmul.f32 %v133_v53, %v131_v56  ;;  %v150_v3 = vmax.f32 %v149_v57, 0.0  ;;  %v164_v4 = vadd.f32 %v163_v59, %v160_v58 }
  0x51   :  { %v135_v5 = vadd.f32 %v134_v63, %v116_v60  ;;  %v153_v6 = vmul.f32 %v152_v61, %v150_v3  ;;  %v168_v7 = vadd.f32 %v167_v62, %v164_v4 }
  0x53   :  { %v154_v8 = vadd.f32 %v153_v6, %v135_v5  ;;  %v169_v9 = vmax.f32 %v168_v7, 0.0 }
  0x55   :  { %v172_v10 = vmul.f32 %v171_v0, %v169_v9 }
  0x57   :  { %v173_v11 = vadd.f32 %v172_v10, %v154_v8 }
  0x59   :  { %174 = vst [vmem:[#allocation11] sm:$0xff] %v173_v11 }
  0x5a   :  { %290 = shalt.err (!%p287_p13)
}
  0x5b   :  { %s291_s20 = scalar_lea.hbm %s462_s5, 128 }
  0x5c   :  { %p292_p0 = scmp.ne.s32.totalorder %s462_s5, %s291_s20  ;;  %p295_p1 = scmp.lt.u32.totalorder %s291_s20, %s462_s5 }
  0x5e   :  { %p297_p2 = pnand %p295_p1, %p292_p0 }
  0x60   :  { %300 = shalt.err (!%p297_p2)
}
  0x61   :  { %184 = dma.vmem_to_hbm [thread:$0]  %s182_s0, 128, %s462_s5, [#allocation5]  }
  0x62   :  { %307 = dma.done.wait [#allocation5], 128  }
  0x63   :  { %308 = vsyncadd [#allocation5], 4294967168 }
  0x64   :  { %188 = vsyncpa [#allocation4], 1 }
  0x65   :  { %189 = vsyncpa [#allocation5], 1 }
  0x66   :  { %190 = vsyncpa [#allocation6], 1 }
  0x67   :  { %191 = vsyncpa [#allocation9], 1 }

</bundles_post_ra>
